<compile_context>
chip_gen: v6e
topology: v6e:2x2x1
jax: 0.10.0
libtpu: 0.0.40
codegen_flags: <defaults>
</compile_context>

<pallas_src>
import functools

import jax
import jax.numpy as jnp
from jax.experimental import pallas as pl
from jax.experimental.pallas import tpu as pltpu

EPS = 1e-5


def _dvsa_kernel(mask_ref, vis_ref, wt_ref, dsim_ref, dind_ref, *,
                 a_block, Ns, Nb):
    """One grid step handles `a_block` videos (a_block*Nb*Ns visual rows).

    vis_ref : (a_block*Nb*Ns, D)  visual rows, ordered (video, box, segment)
    wt_ref  : (D, C_pad)          pre-normalized, pre-transposed word features
    mask_ref: (1, C_pad)          1.0 where the entity slot is padding
    dsim_ref: (a_block*Ns, C_pad) max over the Nb boxes of each segment
    dind_ref: (a_block*Ns, C_pad) argmax over the Nb boxes of each segment
    """
    v = vis_ref[...]
    # L2 row-normalization of the per-step vis block only (word norm is hoisted
    # to the wrapper).  sqrt -> EUP, reciprocal-multiply instead of VALU divide.
    ss = jnp.sum(v * v, axis=1, keepdims=True)
    vn = v * pl.reciprocal(jnp.sqrt(ss) + EPS)          # exact (approx=False)

    # (rows, D) @ (D, C_pad) on the MXU, f32 accumulate.
    s = jnp.dot(vn, wt_ref[...], preferred_element_type=jnp.float32)
    c_pad = s.shape[-1]

    # Box reduction: rows are ordered (video, box, segment), so each box slice
    # is a contiguous (a_block, Ns, C_pad) tile — no strided sublane traffic.
    s4 = s.reshape(a_block, Nb, Ns, c_pad)
    best = s4[:, 0]
    bidx = jnp.zeros(best.shape, jnp.int32)
    for b in range(1, Nb):                               # Nb is small: unroll
        cur = s4[:, b]
        take = cur > best                                # strict '>' == argmax
        best = jnp.where(take, cur, best)                # first-max tiebreak
        bidx = jnp.where(take, jnp.int32(b), bidx)

    best = best.reshape(a_block * Ns, c_pad)
    bidx = bidx.reshape(a_block * Ns, c_pad)

    # Deferred affine + mask (monotone / column-uniform => max/argmax safe).
    m = mask_ref[...] > 0.5                              # (1, C_pad)
    dsim_ref[...] = jnp.where(m, 0.0, (best + 1.0) * 0.5)
    dind_ref[...] = jnp.where(m, 0, bidx)                # masked cols -> idx 0


def _pick_a_block(Na, Ns, Nb, D, C_pad, *, target_rows=256,
                  vmem_budget=16 * 1024 * 1024):
    """Largest divisor of Na whose block fits a conservative VMEM budget."""
    best = 1
    for ab in range(1, Na + 1):
        if Na % ab:
            continue
        rows = ab * Nb * Ns
        # rough resident set (f32): double-buffered vis block + word/mask +
        # similarity intermediate + double-buffered outputs.
        need = (2 * rows * D + C_pad * D + C_pad + rows * C_pad
                + 2 * 2 * ab * Ns * C_pad) * 4
        if need > vmem_budget:
            break
        best = ab
        if rows >= target_rows:
            break
    return best


def dvsa_forward(vis_feats, word_feats, entities_length, *,
                 Na, Ns, Nb, Ne, delta=0.2, a_block=None):
    """Eval-phase DVSA.forward: returns (D_ind, D_sim, margin_loss)."""
    D = vis_feats.shape[-1]
    C = Na * Ne
    C_pad = ((C + 127) // 128) * 128                     # lane-dense outputs

    ent = jnp.asarray(entities_length, jnp.int32)
    # zero2one
    div_vec = jnp.where(ent == 0, 1, ent).astype(jnp.float32)            # (Na,)
    # S_mask: mask[act, e] = 1 for e >= entities_length[act]; pad cols masked.
    mask = (jnp.arange(Ne, dtype=jnp.int32)[None, :] >= ent[:, None])
    mask = mask.astype(jnp.float32).reshape(1, C)
    mask = jnp.pad(mask, ((0, 0), (0, C_pad - C)), constant_values=1.0)

    # Hoist word normalization + transpose out of the kernel (grid-invariant).
    wn = word_feats / (jnp.sqrt(jnp.sum(word_feats * word_feats, axis=1,
                                        keepdims=True)) + EPS)
    wT = jnp.pad(wn.T, ((0, 0), (0, C_pad - C)))                         # (D, C_pad)

    # Reorder vis rows (Na, Ns, Nb, D) -> (Na, Nb, Ns, D): per-box slices in
    # the kernel become contiguous (Ns, C_pad) tiles.
    vis_r = vis_feats.reshape(Na, Ns, Nb, D).transpose(0, 2, 1, 3)
    vis_r = vis_r.reshape(Na * Nb * Ns, D)

    if a_block is None:
        a_block = _pick_a_block(Na, Ns, Nb, D, C_pad)
    assert Na % a_block == 0, "a_block must divide Na"
    grid = (Na // a_block,)

    rows_per_step = a_block * Nb * Ns
    cost = pl.CostEstimate(
        flops=2 * Na * Ns * Nb * C_pad * D,
        transcendentals=Na * Ns * Nb,                    # one sqrt per vis row
        bytes_accessed=4 * (Na * Ns * Nb * D + D * C_pad + C_pad
                            + 2 * Na * Ns * C_pad))

    kernel = functools.partial(_dvsa_kernel, a_block=a_block, Ns=Ns, Nb=Nb)
    d_sim_p, d_ind_p = pl.pallas_call(
        kernel,
        out_shape=(jax.ShapeDtypeStruct((Na * Ns, C_pad), jnp.float32),
                   jax.ShapeDtypeStruct((Na * Ns, C_pad), jnp.int32)),
        grid_spec=pltpu.PrefetchScalarGridSpec(
            num_scalar_prefetch=0,
            grid=grid,
            in_specs=[
                pl.BlockSpec((1, C_pad), lambda a: (0, 0)),          # mask
                pl.BlockSpec((rows_per_step, D), lambda a: (a, 0)),  # vis rows
                pl.BlockSpec((D, C_pad), lambda a: (0, 0)),          # word.T
            ],
            out_specs=[
                pl.BlockSpec((a_block * Ns, C_pad), lambda a: (a, 0)),
                pl.BlockSpec((a_block * Ns, C_pad), lambda a: (a, 0)),
            ]),
        compiler_params=pltpu.CompilerParams(
            dimension_semantics=("parallel",)),
        cost_estimate=cost,
    )(mask, vis_r, wT)

    # Slice the lane padding back off before the epilogue.
    d_sim = d_sim_p[:, :C]
    d_ind = d_ind_p[:, :C]

    # ---- tiny glue: frame / margin loss (matches the torch epilogue) ----
    # S = S_.view(Na*Ns, Nb, Na*Ne).max(1)  ==  d_sim
    Sf = d_sim.reshape(Na, Ns, Na, Ne).sum(-1) / div_vec[None, None, :]  # (Na,Ns,Na)
    Sf_diag = jnp.diagonal(Sf, axis1=0, axis2=2).T[:, :, None]           # (Na,Ns,1)
    term1 = jnp.maximum(
        Sf - jnp.transpose(Sf_diag, (2, 1, 0)) + delta, 0.0).mean(0).T   # (Na,Ns)
    term2 = jnp.maximum(Sf - Sf_diag + delta, 0.0).mean(2)               # (Na,Ns)
    margin_loss = (term1 + term2).mean() * 10.0

    return d_ind, d_sim, margin_loss


def _reference(vis_feats, word_feats, entities_length, *, Na, Ns, Nb, Ne, delta):
    """Plain-JAX mirror of the torch eval path, for verification."""
    vn = vis_feats / (jnp.linalg.norm(vis_feats, axis=1, keepdims=True) + EPS)
    wn = word_feats / (jnp.linalg.norm(word_feats, axis=1, keepdims=True) + EPS)
    S_ = (vn @ wn.T + 1.0) / 2.0
    ent = jnp.asarray(entities_length, jnp.int32)
    mask = (jnp.arange(Ne)[None, :] >= ent[:, None]).reshape(-1)
    S_ = jnp.where(mask[None, :], 0.0, S_)
    Ssim = S_.reshape(Na * Ns, Nb, Na * Ne)
    d_sim = Ssim.max(1)
    d_ind = Ssim.argmax(1).astype(jnp.int32)
    div_vec = jnp.where(ent == 0, 1, ent).astype(jnp.float32)
    Sf = d_sim.reshape(Na, Ns, Na, Ne).sum(-1) / div_vec[None, None, :]
    Sf_diag = jnp.diagonal(Sf, axis1=0, axis2=2).T[:, :, None]
    t1 = jnp.maximum(Sf - jnp.transpose(Sf_diag, (2, 1, 0)) + delta, 0.0).mean(0).T
    t2 = jnp.maximum(Sf - Sf_diag + delta, 0.0).mean(2)
    margin_loss = (t1 + t2).mean() * 10.0
    return d_ind, d_sim, margin_loss


if __name__ == "__main__":
    # Small shapes consistent with the forward:
    #   vis_feats  : (Na*Ns*Nb, D)
    #   word_feats : (Na*Ne,   D)
    Na, Ns, Nb, Ne, D = 2, 8, 8, 4, 128
    delta = 0.2
    entities_length = [3, 0]   # includes 0 to exercise zero2one / full masking

    key = jax.random.PRNGKey(0)
    kv, kw = jax.random.split(key)
    vis_feats = jax.random.normal(kv, (Na * Ns * Nb, D), jnp.float32)
    word_feats = jax.random.normal(kw, (Na * Ne, D), jnp.float32)

    d_ind, d_sim, margin_loss = dvsa_forward(
        vis_feats, word_feats, entities_length,
        Na=Na, Ns=Ns, Nb=Nb, Ne=Ne, delta=delta)
    jax.block_until_ready((d_ind, d_sim, margin_loss))

    r_ind, r_sim, r_loss = _reference(
        vis_feats, word_feats, entities_length,
        Na=Na, Ns=Ns, Nb=Nb, Ne=Ne, delta=delta)

    assert d_sim.shape == (Na * Ns, Na * Ne)
    assert d_ind.shape == (Na * Ns, Na * Ne)
    assert jnp.allclose(d_sim, r_sim, atol=1e-4), "D_sim mismatch"
    assert bool(jnp.all(d_ind == r_ind)), "D_ind mismatch"
    assert jnp.allclose(margin_loss, r_loss, atol=1e-4), "margin_loss mismatch"

    print("KERNEL_OK")
</pallas_src>

<mosaic_0001>
module attributes {stable_mosaic.version = 11 : i64} {
  func.func @_dvsa_kernel(%arg0: i32, %arg1: memref<1x128xf32, #tpu.memory_space<vmem>>, %arg2: memref<128x128xf32, #tpu.memory_space<vmem>>, %arg3: memref<128x128xf32, #tpu.memory_space<vmem>>, %arg4: memref<16x128xf32, #tpu.memory_space<vmem>>, %arg5: memref<16x128xi32, #tpu.memory_space<vmem>>) attributes {dimension_semantics = [#tpu.dimension_semantics<parallel>], iteration_bounds = array<i64: 1>, scalar_prefetch = 0 : i64, scratch_operands = 0 : i64, tpu.core_type = #tpu.core_type<tc>, window_params = [{pipeline_mode = #tpu.pipeline_mode<synchronous>, transform_indices = @transform_0, window_bounds = array<i64: 1, 128>}, {transform_indices = @transform_1, window_bounds = array<i64: 128, 128>}, {pipeline_mode = #tpu.pipeline_mode<synchronous>, transform_indices = @transform_2, window_bounds = array<i64: 128, 128>}, {transform_indices = @transform_3, window_bounds = array<i64: 16, 128>}, {transform_indices = @transform_4, window_bounds = array<i64: 16, 128>}]} {
    %c0 = arith.constant 0 : index
    %c0_0 = arith.constant 0 : index
    %0 = vector.load %arg2[%c0, %c0_0] : memref<128x128xf32, #tpu.memory_space<vmem>>, vector<128x128xf32>
    %1 = arith.mulf %0, %0 : vector<128x128xf32>
    %cst = arith.constant dense<0.000000e+00> : vector<128xf32>
    %2 = vector.multi_reduction <add>, %1, %cst [1] : vector<128x128xf32> to vector<128xf32>
    %3 = vector.shape_cast %2 : vector<128xf32> to vector<128x1xf32>
    %4 = math.sqrt %3 : vector<128x1xf32>
    %cst_1 = arith.constant 9.99999974E-6 : f32
    %5 = vector.broadcast %cst_1 : f32 to vector<128x1xf32>
    %6 = arith.addf %4, %5 : vector<128x1xf32>
    %7 = tpu.reciprocal %6 : vector<128x1xf32> -> vector<128x1xf32>
    %8 = vector.broadcast %7 : vector<128x1xf32> to vector<128x128xf32>
    %9 = arith.mulf %0, %8 : vector<128x128xf32>
    %c0_2 = arith.constant 0 : index
    %c0_3 = arith.constant 0 : index
    %10 = vector.load %arg3[%c0_2, %c0_3] : memref<128x128xf32, #tpu.memory_space<vmem>>, vector<128x128xf32>
    %cst_4 = arith.constant dense<0.000000e+00> : vector<128x128xf32>
    %11 = tpu.matmul %9, %10, %cst_4 {dimension_numbers = #tpu.dot_dimension_numbers<[1], [0], [0], [1], [0, 0, 1, 1], [], []>} : vector<128x128xf32>, vector<128x128xf32>, vector<128x128xf32> -> vector<128x128xf32>
    %12 = vector.shape_cast %11 : vector<128x128xf32> to vector<2x8x8x128xf32>
    %13 = vector.extract_strided_slice %12 {offsets = [0, 0, 0, 0], sizes = [2, 1, 8, 128], strides = [1, 1, 1, 1]} : vector<2x8x8x128xf32> to vector<2x1x8x128xf32>
    %14 = vector.shape_cast %13 : vector<2x1x8x128xf32> to vector<2x8x128xf32>
    %c0_i32 = arith.constant 0 : i32
    %15 = vector.broadcast %c0_i32 : i32 to vector<2x8x128xi32>
    %16 = vector.extract_strided_slice %12 {offsets = [0, 1, 0, 0], sizes = [2, 1, 8, 128], strides = [1, 1, 1, 1]} : vector<2x8x8x128xf32> to vector<2x1x8x128xf32>
    %17 = vector.shape_cast %16 : vector<2x1x8x128xf32> to vector<2x8x128xf32>
    %18 = arith.cmpf ogt, %17, %14 : vector<2x8x128xf32>
    %19 = arith.select %18, %17, %14 : vector<2x8x128xi1>, vector<2x8x128xf32>
    %c1_i32 = arith.constant 1 : i32
    %20 = vector.broadcast %c1_i32 : i32 to vector<2x8x128xi32>
    %21 = arith.select %18, %20, %15 : vector<2x8x128xi1>, vector<2x8x128xi32>
    %22 = vector.extract_strided_slice %12 {offsets = [0, 2, 0, 0], sizes = [2, 1, 8, 128], strides = [1, 1, 1, 1]} : vector<2x8x8x128xf32> to vector<2x1x8x128xf32>
    %23 = vector.shape_cast %22 : vector<2x1x8x128xf32> to vector<2x8x128xf32>
    %24 = arith.cmpf ogt, %23, %19 : vector<2x8x128xf32>
    %25 = arith.select %24, %23, %19 : vector<2x8x128xi1>, vector<2x8x128xf32>
    %c2_i32 = arith.constant 2 : i32
    %26 = vector.broadcast %c2_i32 : i32 to vector<2x8x128xi32>
    %27 = arith.select %24, %26, %21 : vector<2x8x128xi1>, vector<2x8x128xi32>
    %28 = vector.extract_strided_slice %12 {offsets = [0, 3, 0, 0], sizes = [2, 1, 8, 128], strides = [1, 1, 1, 1]} : vector<2x8x8x128xf32> to vector<2x1x8x128xf32>
    %29 = vector.shape_cast %28 : vector<2x1x8x128xf32> to vector<2x8x128xf32>
    %30 = arith.cmpf ogt, %29, %25 : vector<2x8x128xf32>
    %31 = arith.select %30, %29, %25 : vector<2x8x128xi1>, vector<2x8x128xf32>
    %c3_i32 = arith.constant 3 : i32
    %32 = vector.broadcast %c3_i32 : i32 to vector<2x8x128xi32>
    %33 = arith.select %30, %32, %27 : vector<2x8x128xi1>, vector<2x8x128xi32>
    %34 = vector.extract_strided_slice %12 {offsets = [0, 4, 0, 0], sizes = [2, 1, 8, 128], strides = [1, 1, 1, 1]} : vector<2x8x8x128xf32> to vector<2x1x8x128xf32>
    %35 = vector.shape_cast %34 : vector<2x1x8x128xf32> to vector<2x8x128xf32>
    %36 = arith.cmpf ogt, %35, %31 : vector<2x8x128xf32>
    %37 = arith.select %36, %35, %31 : vector<2x8x128xi1>, vector<2x8x128xf32>
    %c4_i32 = arith.constant 4 : i32
    %38 = vector.broadcast %c4_i32 : i32 to vector<2x8x128xi32>
    %39 = arith.select %36, %38, %33 : vector<2x8x128xi1>, vector<2x8x128xi32>
    %40 = vector.extract_strided_slice %12 {offsets = [0, 5, 0, 0], sizes = [2, 1, 8, 128], strides = [1, 1, 1, 1]} : vector<2x8x8x128xf32> to vector<2x1x8x128xf32>
    %41 = vector.shape_cast %40 : vector<2x1x8x128xf32> to vector<2x8x128xf32>
    %42 = arith.cmpf ogt, %41, %37 : vector<2x8x128xf32>
    %43 = arith.select %42, %41, %37 : vector<2x8x128xi1>, vector<2x8x128xf32>
    %c5_i32 = arith.constant 5 : i32
    %44 = vector.broadcast %c5_i32 : i32 to vector<2x8x128xi32>
    %45 = arith.select %42, %44, %39 : vector<2x8x128xi1>, vector<2x8x128xi32>
    %46 = vector.extract_strided_slice %12 {offsets = [0, 6, 0, 0], sizes = [2, 1, 8, 128], strides = [1, 1, 1, 1]} : vector<2x8x8x128xf32> to vector<2x1x8x128xf32>
    %47 = vector.shape_cast %46 : vector<2x1x8x128xf32> to vector<2x8x128xf32>
    %48 = arith.cmpf ogt, %47, %43 : vector<2x8x128xf32>
    %49 = arith.select %48, %47, %43 : vector<2x8x128xi1>, vector<2x8x128xf32>
    %c6_i32 = arith.constant 6 : i32
    %50 = vector.broadcast %c6_i32 : i32 to vector<2x8x128xi32>
    %51 = arith.select %48, %50, %45 : vector<2x8x128xi1>, vector<2x8x128xi32>
    %52 = vector.extract_strided_slice %12 {offsets = [0, 7, 0, 0], sizes = [2, 1, 8, 128], strides = [1, 1, 1, 1]} : vector<2x8x8x128xf32> to vector<2x1x8x128xf32>
    %53 = vector.shape_cast %52 : vector<2x1x8x128xf32> to vector<2x8x128xf32>
    %54 = arith.cmpf ogt, %53, %49 : vector<2x8x128xf32>
    %55 = arith.select %54, %53, %49 : vector<2x8x128xi1>, vector<2x8x128xf32>
    %c7_i32 = arith.constant 7 : i32
    %56 = vector.broadcast %c7_i32 : i32 to vector<2x8x128xi32>
    %57 = arith.select %54, %56, %51 : vector<2x8x128xi1>, vector<2x8x128xi32>
    %58 = vector.shape_cast %55 : vector<2x8x128xf32> to vector<16x128xf32>
    %59 = vector.shape_cast %57 : vector<2x8x128xi32> to vector<16x128xi32>
    %c0_5 = arith.constant 0 : index
    %c0_6 = arith.constant 0 : index
    %60 = vector.load %arg1[%c0_5, %c0_6] : memref<1x128xf32, #tpu.memory_space<vmem>>, vector<1x128xf32>
    %cst_7 = arith.constant 5.000000e-01 : f32
    %61 = vector.broadcast %cst_7 : f32 to vector<1x128xf32>
    %62 = arith.cmpf ogt, %60, %61 : vector<1x128xf32>
    %cst_8 = arith.constant 1.000000e+00 : f32
    %63 = vector.broadcast %cst_8 : f32 to vector<16x128xf32>
    %64 = arith.addf %58, %63 : vector<16x128xf32>
    %cst_9 = arith.constant 5.000000e-01 : f32
    %65 = vector.broadcast %cst_9 : f32 to vector<16x128xf32>
    %66 = arith.mulf %64, %65 : vector<16x128xf32>
    %cst_10 = arith.constant 0.000000e+00 : f32
    %67 = vector.shape_cast %62 : vector<1x128xi1> to vector<1x128xi1>
    %68 = vector.broadcast %67 : vector<1x128xi1> to vector<16x128xi1>
    %69 = vector.broadcast %cst_10 : f32 to vector<16x128xf32>
    %70 = arith.select %68, %69, %66 : vector<16x128xi1>, vector<16x128xf32>
    %c0_11 = arith.constant 0 : index
    %c0_12 = arith.constant 0 : index
    %71 = vector.load %arg4[%c0_11, %c0_12] : memref<16x128xf32, #tpu.memory_space<vmem>>, vector<16x128xf32>
    tpu.vector_store %arg4[%c0_11, %c0_12], %70 {strides = array<i32>} : memref<16x128xf32, #tpu.memory_space<vmem>>, vector<16x128xf32>,
    %c0_i32_13 = arith.constant 0 : i32
    %72 = vector.shape_cast %62 : vector<1x128xi1> to vector<1x128xi1>
    %73 = vector.broadcast %72 : vector<1x128xi1> to vector<16x128xi1>
    %74 = vector.broadcast %c0_i32_13 : i32 to vector<16x128xi32>
    %75 = arith.select %73, %74, %59 : vector<16x128xi1>, vector<16x128xi32>
    %c0_14 = arith.constant 0 : index
    %c0_15 = arith.constant 0 : index
    %76 = vector.load %arg5[%c0_14, %c0_15] : memref<16x128xi32, #tpu.memory_space<vmem>>, vector<16x128xi32>
    tpu.vector_store %arg5[%c0_14, %c0_15], %75 {strides = array<i32>} : memref<16x128xi32, #tpu.memory_space<vmem>>, vector<16x128xi32>,
    return
  }
  func.func @transform_0(%arg0: i32) -> (i32, i32) {
    %c0_i32 = arith.constant 0 : i32
    %c0_i32_0 = arith.constant 0 : i32
    %c0_i32_1 = arith.constant 0 : i32
    return %c0_i32, %c0_i32_0 : i32, i32
  }
  func.func @transform_1(%arg0: i32) -> (i32, i32) {
    %c0_i32 = arith.constant 0 : i32
    %c0_i32_0 = arith.constant 0 : i32
    return %arg0, %c0_i32 : i32, i32
  }
  func.func @transform_2(%arg0: i32) -> (i32, i32) {
    %c0_i32 = arith.constant 0 : i32
    %c0_i32_0 = arith.constant 0 : i32
    %c0_i32_1 = arith.constant 0 : i32
    return %c0_i32, %c0_i32_0 : i32, i32
  }
  func.func @transform_3(%arg0: i32) -> (i32, i32) {
    %c0_i32 = arith.constant 0 : i32
    %c0_i32_0 = arith.constant 0 : i32
    return %arg0, %c0_i32 : i32, i32
  }
  func.func @transform_4(%arg0: i32) -> (i32, i32) {
    %c0_i32 = arith.constant 0 : i32
    %c0_i32_0 = arith.constant 0 : i32
    return %arg0, %c0_i32 : i32, i32
  }
}

</mosaic_0001>

<bundles_post_ra>
// kernel: tpu_custom_call.1
= control target key start
LH: loop header
LB: loop body
LE: loop exit
PB: predicated region body
PF: predicated region fallthrough
CT: control target
= control target key end

     0   :  { %10 = vsyncpa [#allocation3], 0  ;;  %s1153_s0 = inlined_call_operand.hbm [shape: f32[1,128], index: 0, kind: input, shape index: {}]   ;;  %s1154_s1 = inlined_call_operand.hbm [shape: f32[128,128], index: 1, kind: input, shape index: {}]   ;;  %s1155_s2 = inlined_call_operand.hbm [shape: f32[128,128], index: 2, kind: input, shape index: {}]   ;;  %s1156_s3 = inlined_call_operand.hbm [shape: f32[16,128], index: 3, kind: output, shape index: {0}]   ;;  %s1157_s4 = inlined_call_operand.hbm [shape: s32[16,128], index: 4, kind: output, shape index: {1}]  }
   0x1   :  { %11 = vsyncpa [#allocation6], 0 }
   0x2   :  { %12 = vsyncpa [#allocation4], 0 }
   0x3   :  { %13 = vsyncpa [#allocation10], 0  ;;  %s838_s15 = smov [#allocation5]  }
   0x4   :  { %s29_s16 = sshll.u32 %s838_s15, 4  ;;  %s30_s16 = int_to_ptr.vmem [resolvable:$true] %s29_s16 }
   0x5   :  { %s738_s17 = scalar_lea.vmem %s30_s16, 2048  ;;  %p743_p1 = scmp.lt.s32.totalorder %s30_s16, %s30_s16 }
   0x6   :  { %p739_p0 = scmp.ne.s32.totalorder %s30_s16, %s738_s17  ;;  %p744_p2 = scmp.lt.s32.totalorder %s738_s17, %s738_s17 }
   0x8   :  { %p745_p3 = por %p744_p2, %p743_p1 }
   0xa   :  { %p746_p4 = pnand %p745_p3, %p739_p0 }
   0xc   :  { %749 = shalt.err (!%p746_p4)
}
   0xd   :  { %s839_s18 = smov 128   ;;  %s840_s19 = smov 8  }
   0xe   :  { %35 = dma.hbm_to_vmem [thread:$0]  %s1154_s1, 2048, %s30_s16, [#allocation6], %s839_s18, %s839_s18, %s840_s19  }
   0xf   :  { %s841_s22 = smov [#allocation2]   ;;  %s842_s24 = smov [#allocation7]  }
  0x10   :  { %s20_s23 = sshll.u32 %s841_s22, 4  ;;  %s41_s25 = sshll.u32 %s842_s24, 4  ;;  %s21_s23 = int_to_ptr.vmem [resolvable:$true] %s20_s23  ;;  %s42_s25 = int_to_ptr.vmem [resolvable:$true] %s41_s25 }
  0x11   :  { %s758_s26 = scalar_lea.vmem %s21_s23, 16  ;;  %s762_s27 = scalar_lea.vmem %s21_s23, 32 }
  0x12   :  { %p759_p5 = scmp.ne.s32.totalorder %s21_s23, %s758_s26  ;;  %p763_p6 = scmp.lt.s32.totalorder %s21_s23, %s21_s23 }
  0x13   :  { %p764_p7 = scmp.lt.s32.totalorder %s762_s27, %s758_s26 }
  0x15   :  { %p765_p8 = por %p764_p7, %p763_p6 }
  0x17   :  { %p766_p9 = pnand %p765_p8, %p759_p5 }
  0x19   :  { %769 = shalt.err (!%p766_p9)
}
  0x1a   :  { %23 = dma.hbm_to_vmem [thread:$0]  %s1153_s0, 16, %s21_s23, [#allocation3]  }
  0x1b   :  { %s778_s30 = scalar_lea.vmem %s42_s25, 2048  ;;  %p783_p11 = scmp.lt.s32.totalorder %s42_s25, %s42_s25 }
  0x1c   :  { %p779_p10 = scmp.ne.s32.totalorder %s42_s25, %s778_s30  ;;  %p784_p12 = scmp.lt.s32.totalorder %s778_s30, %s778_s30 }
  0x1e   :  { %p785_p13 = por %p784_p12, %p783_p11 }
  0x20   :  { %p786_p0 = pnand %p785_p13, %p779_p10 }
  0x22   :  { %789 = shalt.err (!%p786_p0)
}
  0x23   :  { %47 = dma.hbm_to_vmem [thread:$0]  %s1155_s2, 2048, %s42_s25, [#allocation6], %s839_s18, %s839_s18, %s840_s19  }
  0x24   :  { %830 = dma.done.wait [#allocation3], 16  }
  0x25   :  { %831 = vsyncadd [#allocation3], 4294967280 }
  0x26   :  { %832 = dma.done.wait [#allocation6], 4096  }
  0x27   :  { %833 = vsyncadd [#allocation6], 4294963200  ;;  %v886_v0 = vld [vmem:[#allocation5 + $0x8] sm:$0xff]  ;;  %v888_v1 = vld [vmem:[#allocation5] sm:$0xff]  ;;  %s844_s0 = smov [#allocation9]   ;;  %s845_s6 = smov [#allocation8]  }
  0x28   :  { %v890_v2 = vld [vmem:[#allocation5 + $0x48] sm:$0xff]  ;;  %v74_v3 = vmul.f32 %v886_v0, %v886_v0  ;;  %v73_v4 = vmul.f32 %v888_v1, %v888_v1  ;;  %v896_v5 = vld [vmem:[#allocation5 + $0x40] sm:$0xff]  ;;  %v902_v8 = vld [vmem:[#allocation5 + $0x50] sm:$0xff]  ;;  %s521_s2 = sshll.u32 %s844_s0, 4  ;;  %s509_s7 = sshll.u32 %s845_s6, 4  ;;  %s522_s2 = int_to_ptr.vmem [resolvable:$true] %s521_s2  ;;  %s510_s7 = int_to_ptr.vmem [resolvable:$true] %s509_s7 }
  0x29   :  { %v82_v6 = vmul.f32 %v890_v2, %v890_v2  ;;  %v81_v7 = vmul.f32 %v896_v5, %v896_v5  ;;  %v904_v9 = vld [vmem:[#allocation5 + $0x10] sm:$0xff]  ;;  %v83_v10 = vmul.f32 %v902_v8, %v902_v8  ;;  %v910_v12 = vld [vmem:[#allocation5 + $0x58] sm:$0xff]  ;;  %v918_v16 = vld [vmem:[#allocation5 + $0x60] sm:$0xff]  ;;  %s790_s8 = scalar_lea.vmem %s522_s2, 256  ;;  %p795_p2 = scmp.lt.s32.totalorder %s522_s2, %s522_s2 }
  0x2a   :  { %91 = vadd.xlane.f32.xlu1 %v74_v3  ;;  %89 = vadd.xlane.f32.xlu0 %v73_v4  ;;  %v75_v11 = vmul.f32 %v904_v9, %v904_v9  ;;  %v912_v13 = vld [vmem:[#allocation5 + $0x18] sm:$0xff]  ;;  %v84_v14 = vmul.f32 %v910_v12, %v910_v12  ;;  %v920_v17 = vld [vmem:[#allocation5 + $0x20] sm:$0xff]  ;;  %v85_v18 = vmul.f32 %v918_v16, %v918_v16  ;;  %v926_v20 = vld [vmem:[#allocation5 + $0x68] sm:$0xff]  ;;  %p791_p1 = scmp.ne.s32.totalorder %s522_s2, %s790_s8  ;;  %p796_p3 = scmp.lt.s32.totalorder %s790_s8, %s790_s8 }
  0x2b   :  { %v76_v15 = vmul.f32 %v912_v13, %v912_v13  ;;  %v77_v19 = vmul.f32 %v920_v17, %v920_v17  ;;  %v928_v21 = vld [vmem:[#allocation5 + $0x28] sm:$0xff]  ;;  %v296_v22 = vld [vmem:[#allocation7 + $0x78] sm:$0xff]  ;;  %v86_v23 = vmul.f32 %v926_v20, %v926_v20  ;;  %v934_v25 = vld [vmem:[#allocation5 + $0x70] sm:$0xff] }
  0x2c   :  { %v78_v24 = vmul.f32 %v928_v21, %v928_v21  ;;  %v936_v26 = vld [vmem:[#allocation5 + $0x30] sm:$0xff]  ;;  %570 = vmatprep.subr.mxu0 %v296_v22  ;;  %626 = vmatprep.subr.mxu1 %v296_v22  ;;  %v294_v28 = vld [vmem:[#allocation7 + $0x68] sm:$0xff]  ;;  %v87_v29 = vmul.f32 %v934_v25, %v934_v25  ;;  %v942_v31 = vld [vmem:[#allocation5 + $0x78] sm:$0xff]  ;;  %p797_p4 = por %p796_p3, %p795_p2 }
  0x2d   :  { %v295_v27 = vld [vmem:[#allocation7 + $0x70] sm:$0xff]  ;;  %571 = vmatpush3.msra.mxu0 %v296_v22  ;;  %642 = vmatpush3.msra.mxu1 %v296_v22  ;;  %v79_v30 = vmul.f32 %v936_v26, %v936_v26  ;;  %v944_v32 = vld [vmem:[#allocation5 + $0x38] sm:$0xff]  ;;  %v293_v33 = vld [vmem:[#allocation7 + $0x60] sm:$0xff]  ;;  %v88_v34 = vmul.f32 %v942_v31, %v942_v31 }
  0x2e   :  { %107 = vadd.xlane.f32.xlu1 %v82_v6  ;;  %105 = vadd.xlane.f32.xlu0 %v81_v7  ;;  %v80_v35 = vmul.f32 %v944_v32, %v944_v32  ;;  %v292_v36 = vld [vmem:[#allocation7 + $0x58] sm:$0xff]  ;;  %v291_v37 = vld [vmem:[#allocation7 + $0x50] sm:$0xff]  ;;  %v290_v38 = vld [vmem:[#allocation7 + $0x48] sm:$0xff]  ;;  %p798_p5 = pnand %p797_p4, %p791_p1 }
  0x2f   :  { %572 = vmatprep.subr.mxu0 %v295_v27  ;;  %627 = vmatprep.subr.mxu1 %v295_v27  ;;  %v289_v39 = vld [vmem:[#allocation7 + $0x40] sm:$0xff]  ;;  %v288_v40 = vld [vmem:[#allocation7 + $0x38] sm:$0xff]  ;;  %v287_v41 = vld [vmem:[#allocation7 + $0x30] sm:$0xff] }
  0x30   :  { %573 = vmatpush3.msra.mxu0 %v295_v27  ;;  %643 = vmatpush3.msra.mxu1 %v295_v27  ;;  %v286_v42 = vld [vmem:[#allocation7 + $0x28] sm:$0xff]  ;;  %v285_v43 = vld [vmem:[#allocation7 + $0x20] sm:$0xff]  ;;  %v284_v44 = vld [vmem:[#allocation7 + $0x18] sm:$0xff] }
  0x31   :  { %574 = vmatprep.subr.mxu0 %v294_v28  ;;  %628 = vmatprep.subr.mxu1 %v294_v28  ;;  %v283_v45 = vld [vmem:[#allocation7 + $0x10] sm:$0xff]  ;;  %v282_v46 = vld [vmem:[#allocation7 + $0x8] sm:$0xff]  ;;  %v281_v47 = vld [vmem:[#allocation7] sm:$0xff] }
  0x32   :  { %109 = vadd.xlane.f32.xlu1 %v83_v10  ;;  %93 = vadd.xlane.f32.xlu0 %v75_v11 }
  0x33   :  { %575 = vmatpush3.msra.mxu0 %v294_v28  ;;  %644 = vmatpush3.msra.mxu1 %v294_v28 }
  0x34   :  { %576 = vmatprep.subr.mxu0 %v293_v33  ;;  %629 = vmatprep.subr.mxu1 %v293_v33 }
  0x35   :  { %577 = vmatpush3.msra.mxu0 %v293_v33  ;;  %645 = vmatpush3.msra.mxu1 %v293_v33 }
  0x36   :  { %111 = vadd.xlane.f32.xlu1 %v84_v14  ;;  %95 = vadd.xlane.f32.xlu0 %v76_v15 }
  0x37   :  { %578 = vmatprep.subr.mxu0 %v292_v36  ;;  %630 = vmatprep.subr.mxu1 %v292_v36 }
  0x38   :  { %579 = vmatpush3.msra.mxu0 %v292_v36  ;;  %646 = vmatpush3.msra.mxu1 %v292_v36 }
  0x39   :  { %580 = vmatprep.subr.mxu0 %v291_v37  ;;  %631 = vmatprep.subr.mxu1 %v291_v37 }
  0x3a   :  { %113 = vadd.xlane.f32.xlu1 %v85_v18  ;;  %97 = vadd.xlane.f32.xlu0 %v77_v19 }
  0x3b   :  { %581 = vmatpush3.msra.mxu0 %v291_v37  ;;  %647 = vmatpush3.msra.mxu1 %v291_v37 }
  0x3c   :  { %582 = vmatprep.subr.mxu0 %v290_v38  ;;  %632 = vmatprep.subr.mxu1 %v290_v38 }
  0x3d   :  { %583 = vmatpush3.msra.mxu0 %v290_v38  ;;  %648 = vmatpush3.msra.mxu1 %v290_v38 }
  0x3e   :  { %115 = vadd.xlane.f32.xlu1 %v86_v23  ;;  %99 = vadd.xlane.f32.xlu0 %v78_v24 }
  0x3f   :  { %584 = vmatprep.subr.mxu0 %v289_v39  ;;  %633 = vmatprep.subr.mxu1 %v289_v39 }
  0x40   :  { %585 = vmatpush3.msra.mxu0 %v289_v39  ;;  %649 = vmatpush3.msra.mxu1 %v289_v39 }
  0x41   :  { %586 = vmatprep.subr.mxu0 %v288_v40  ;;  %634 = vmatprep.subr.mxu1 %v288_v40 }
  0x42   :  { %117 = vadd.xlane.f32.xlu1 %v87_v29  ;;  %101 = vadd.xlane.f32.xlu0 %v79_v30 }
  0x43   :  { %587 = vmatpush3.msra.mxu0 %v288_v40  ;;  %650 = vmatpush3.msra.mxu1 %v288_v40 }
  0x44   :  { %588 = vmatprep.subr.mxu0 %v287_v41  ;;  %635 = vmatprep.subr.mxu1 %v287_v41 }
  0x45   :  { %589 = vmatpush3.msra.mxu0 %v287_v41  ;;  %651 = vmatpush3.msra.mxu1 %v287_v41 }
  0x46   :  { %119 = vadd.xlane.f32.xlu1 %v88_v34  ;;  %103 = vadd.xlane.f32.xlu0 %v80_v35 }
  0x47   :  { %590 = vmatprep.subr.mxu0 %v286_v42  ;;  %636 = vmatprep.subr.mxu1 %v286_v42 }
  0x48   :  { %591 = vmatpush3.msra.mxu0 %v286_v42  ;;  %652 = vmatpush3.msra.mxu1 %v286_v42 }
  0x49   :  { %592 = vmatprep.subr.mxu0 %v285_v43  ;;  %637 = vmatprep.subr.mxu1 %v285_v43 }
  0x4a   :  { %593 = vmatpush3.msra.mxu0 %v285_v43  ;;  %653 = vmatpush3.msra.mxu1 %v285_v43 }
  0x4b   :  { %594 = vmatprep.subr.mxu0 %v284_v44  ;;  %638 = vmatprep.subr.mxu1 %v284_v44 }
  0x4c   :  { %595 = vmatpush3.msra.mxu0 %v284_v44  ;;  %654 = vmatpush3.msra.mxu1 %v284_v44 }
  0x4d   :  { %596 = vmatprep.subr.mxu0 %v283_v45  ;;  %639 = vmatprep.subr.mxu1 %v283_v45 }
  0x4e   :  { %597 = vmatpush3.msra.mxu0 %v283_v45  ;;  %655 = vmatpush3.msra.mxu1 %v283_v45 }
  0x4f   :  { %598 = vmatprep.subr.mxu0 %v282_v46  ;;  %640 = vmatprep.subr.mxu1 %v282_v46 }
  0x50   :  { %599 = vmatpush3.msra.mxu0 %v282_v46  ;;  %656 = vmatpush3.msra.mxu1 %v282_v46 }
  0x51   :  { %600 = vmatprep.subr.mxu0 %v281_v47  ;;  %641 = vmatprep.subr.mxu1 %v281_v47 }
  0x52   :  { %601 = vmatpush3.msra.mxu0 %v281_v47  ;;  %657 = vmatpush3.msra.mxu1 %v281_v47 }
  0xb3   :  { %v92_v48 = vpop.xlane.xlu1 %91  ;;  %v950_v49 = vpop.xlane.xlu0 %89 }
  0xb4   :  { %666 = vrsqrt.f32 %v92_v48  ;;  %vm130_vm0 = vcmp.eq.f32.partialorder %v92_v48, inf  ;;  %vm132_vm1 = vcmp.eq.f32.partialorder %v92_v48, 0.0  ;;  %v133_v61 = vand.u32 2147483648, %v92_v48 }
  0xb5   :  { %668 = vrsqrt.f32 %v950_v49  ;;  %vm123_vm2 = vcmp.eq.f32.partialorder %v950_v49, inf  ;;  %vm125_vm3 = vcmp.eq.f32.partialorder %v950_v49, 0.0  ;;  %v126_v63 = vand.u32 2147483648, %v950_v49 }
  0xb7   :  { %v953_v50 = vpop.xlane.xlu1 %107  ;;  %v955_v51 = vpop.xlane.xlu0 %105 }
  0xb8   :  { %670 = vrsqrt.f32 %v953_v50  ;;  %vm186_vm4 = vcmp.eq.f32.partialorder %v953_v50, inf  ;;  %vm188_vm5 = vcmp.eq.f32.partialorder %v953_v50, 0.0  ;;  %v189_v7 = vand.u32 2147483648, %v953_v50 }
  0xb9   :  { %672 = vrsqrt.f32 %v955_v51  ;;  %vm179_vm6 = vcmp.eq.f32.partialorder %v955_v51, inf  ;;  %v182_v10 = vand.u32 2147483648, %v955_v51  ;;  %vm181_vm12 = vcmp.eq.f32.partialorder %v955_v51, 0.0 }
  0xbb   :  { %v959_v52 = vpop.xlane.xlu1 %109  ;;  %v961_v53 = vpop.xlane.xlu0 %93 }
  0xbc   :  { %674 = vrsqrt.f32 %v959_v52  ;;  %vm193_vm7 = vcmp.eq.f32.partialorder %v959_v52, inf  ;;  %vm195_vm8 = vcmp.eq.f32.partialorder %v959_v52, 0.0  ;;  %v196_v18 = vand.u32 2147483648, %v959_v52 }
  0xbd   :  { %676 = vrsqrt.f32 %v961_v53  ;;  %vm137_vm9 = vcmp.eq.f32.partialorder %v961_v53, inf  ;;  %vm139_vm10 = vcmp.eq.f32.partialorder %v961_v53, 0.0  ;;  %v140_v19 = vand.u32 2147483648, %v961_v53 }
  0xbf   :  { %v965_v54 = vpop.xlane.xlu1 %111  ;;  %v967_v55 = vpop.xlane.xlu0 %95 }
  0xc0   :  { %678 = vrsqrt.f32 %v965_v54  ;;  %vm200_vm11 = vcmp.eq.f32.partialorder %v965_v54, inf  ;;  %v203_v30 = vand.u32 2147483648, %v965_v54  ;;  %vm202_vm13 = vcmp.eq.f32.partialorder %v965_v54, 0.0 }
  0xc1   :  { %v667_v56 = vpop.eup %666  ;;  %680 = vrsqrt.f32 %v967_v55  ;;  %vm144_vm14 = vcmp.eq.f32.partialorder %v967_v55, inf  ;;  %vm146_vm15 = vcmp.eq.f32.partialorder %v967_v55, 0.0  ;;  %v147_v34 = vand.u32 2147483648, %v967_v55 }
  0xc2   :  { %v129_v57 = vmul.f32 %v667_v56, %v92_v48  ;;  %v669_v58 = vpop.eup %668 }
  0xc3   :  { %v971_v59 = vpop.xlane.xlu1 %113  ;;  %v973_v60 = vpop.xlane.xlu0 %97  ;;  %v122_v4 = vmul.f32 %v669_v58, %v950_v49 }
  0xc4   :  { %682 = vrsqrt.f32 %v971_v59  ;;  %v131_v3 = vsel %vm130_vm0, %v92_v48, %v129_v57  ;;  %vm207_vm0 = vcmp.eq.f32.partialorder %v971_v59, inf }
  0xc5   :  { %v671_v62 = vpop.eup %670  ;;  %684 = vrsqrt.f32 %v973_v60  ;;  %v134_v23 = vsel %vm132_vm1, %v133_v61, %v131_v3  ;;  %v124_v28 = vsel %vm123_vm2, %v950_v49, %v122_v4  ;;  %vm209_vm1 = vcmp.eq.f32.partialorder %v971_v59, 0.0 }
  0xc6   :  { %v185_v6 = vmul.f32 %v671_v62, %v953_v50  ;;  %v673_v15 = vpop.eup %672  ;;  %v234_v36 = vadd.f32 1e-05, %v134_v23  ;;  %v127_v42 = vsel %vm125_vm3, %v126_v63, %v124_v28  ;;  %vm151_vm2 = vcmp.eq.f32.partialorder %v973_v60, inf }
  0xc7   :  { %v989_v11 = vpop.xlane.xlu1 %115  ;;  %v991_v14 = vpop.xlane.xlu0 %99  ;;  %v178_v38 = vmul.f32 %v673_v15, %v955_v51  ;;  %v233_v56 = vadd.f32 1e-05, %v127_v42  ;;  %vm153_vm3 = vcmp.eq.f32.partialorder %v973_v60, 0.0 }
  0xc8   :  { %v187_v24 = vsel %vm186_vm4, %v953_v50, %v185_v6  ;;  %686 = vrsqrt.f32 %v989_v11  ;;  %v210_v50 = vand.u32 2147483648, %v971_v59  ;;  %vm214_vm4 = vcmp.eq.f32.partialorder %v989_v11, inf }
  0xc9   :  { %v675_v22 = vpop.eup %674  ;;  %688 = vrsqrt.f32 %v991_v14  ;;  %v190_v37 = vsel %vm188_vm5, %v189_v7, %v187_v24  ;;  %vm216_vm5 = vcmp.eq.f32.partialorder %v989_v11, 0.0 }
  0xca   :  { %v677_v27 = vpop.eup %676  ;;  %v192_v29 = vmul.f32 %v675_v22, %v959_v52  ;;  %v242_v48 = vadd.f32 1e-05, %v190_v37  ;;  %v161_v37 = vand.u32 2147483648, %v991_v14 }
  0xcb   :  { %v136_v33 = vmul.f32 %v677_v27, %v961_v53  ;;  %v1015_v35 = vpop.xlane.xlu1 %117  ;;  %v1023_v40 = vpop.xlane.xlu0 %101 }
  0xcc   :  { %v194_v39 = vsel %vm193_vm7, %v959_v52, %v192_v29  ;;  %690 = vrsqrt.f32 %v1015_v35  ;;  %vm160_vm7 = vcmp.eq.f32.partialorder %v991_v14, 0.0 }
  0xcd   :  { %v679_v41 = vpop.eup %678  ;;  %v197_v43 = vsel %vm195_vm8, %v196_v18, %v194_v39  ;;  %v138_v44 = vsel %vm137_vm9, %v961_v53, %v136_v33  ;;  %692 = vrsqrt.f32 %v1023_v40  ;;  %v180_v53 = vsel %vm179_vm6, %v955_v51, %v178_v38 }
  0xce   :  { %v681_v45 = vpop.eup %680  ;;  %v141_v46 = vsel %vm139_vm10, %v140_v19, %v138_v44  ;;  %v199_v47 = vmul.f32 %v679_v41, %v965_v54  ;;  %v243_v57 = vadd.f32 1e-05, %v197_v43  ;;  %694 = vrcp.f32 %v234_v36 }
  0xcf   :  { %v143_v49 = vmul.f32 %v681_v45, %v967_v55  ;;  %v1041_v52 = vpop.xlane.xlu1 %119  ;;  %v235_v61 = vadd.f32 1e-05, %v141_v46  ;;  %v183_v7 = vsel %vm181_vm12, %v182_v10, %v180_v53  ;;  %v154_v18 = vand.u32 2147483648, %v973_v60  ;;  %v1064_v19 = vpop.xlane.xlu0 %103 }
  0xd0   :  { %v201_v62 = vsel %vm200_vm11, %v965_v54, %v199_v47  ;;  %696 = vrsqrt.f32 %v1041_v52  ;;  %v241_v27 = vadd.f32 1e-05, %v183_v7  ;;  %vm158_vm6 = vcmp.eq.f32.partialorder %v991_v14, inf }
  0xd1   :  { %v683_v58 = vpop.eup %682  ;;  %v145_v63 = vsel %vm144_vm14, %v967_v55, %v143_v49  ;;  %698 = vrcp.f32 %v242_v48  ;;  %v204_v55 = vsel %vm202_vm13, %v203_v30, %v201_v62  ;;  %vm221_vm8 = vcmp.eq.f32.partialorder %v1015_v35, inf }
  0xd2   :  { %v685_v3 = vpop.eup %684  ;;  %v148_v4 = vsel %vm146_vm15, %v147_v34, %v145_v63  ;;  %v206_v6 = vmul.f32 %v683_v58, %v971_v59  ;;  %700 = vrcp.f32 %v243_v57  ;;  %v244_v29 = vadd.f32 1e-05, %v204_v55 }
  0xd3   :  { %v150_v15 = vmul.f32 %v685_v3, %v973_v60  ;;  %v236_v22 = vadd.f32 1e-05, %v148_v4  ;;  %702 = vrcp.f32 %v235_v61  ;;  %v217_v34 = vand.u32 2147483648, %v989_v11 }
  0xd4   :  { %v208_v23 = vsel %vm207_vm0, %v971_v59, %v206_v6  ;;  %704 = vrsqrt.f32 %v1064_v19  ;;  %v224_v47 = vand.u32 2147483648, %v1015_v35  ;;  %vm223_vm9 = vcmp.eq.f32.partialorder %v1015_v35, 0.0 }
  0xd5   :  { %v211_v51 = vsel %vm209_vm1, %v210_v50, %v208_v23  ;;  %v152_v10 = vsel %vm151_vm2, %v973_v60, %v150_v15  ;;  %v687_v24 = vpop.eup %686  ;;  %706 = vrcp.f32 %v233_v56  ;;  %vm165_vm10 = vcmp.eq.f32.partialorder %v1023_v40, inf }
  0xd6   :  { %v155_v54 = vsel %vm153_vm3, %v154_v18, %v152_v10  ;;  %v689_v28 = vpop.eup %688  ;;  %v213_v59 = vmul.f32 %v687_v24, %v989_v11  ;;  %708 = vrcp.f32 %v236_v22  ;;  %v245_v33 = vadd.f32 1e-05, %v211_v51 }
  0xd7   :  { %v237_v30 = vadd.f32 1e-05, %v155_v54  ;;  %v157_v36 = vmul.f32 %v689_v28, %v991_v14  ;;  %v168_v50 = vand.u32 2147483648, %v1023_v40  ;;  %vm167_vm11 = vcmp.eq.f32.partialorder %v1023_v40, 0.0 }
  0xd8   :  { %v215_v60 = vsel %vm214_vm4, %v989_v11, %v213_v59  ;;  %vm228_vm12 = vcmp.eq.f32.partialorder %v1041_v52, inf  ;;  %v231_v3 = vand.u32 2147483648, %v1041_v52  ;;  %vm230_vm13 = vcmp.eq.f32.partialorder %v1041_v52, 0.0 }
  0xd9   :  { %710 = vrcp.f32 %v237_v30  ;;  %v691_v38 = vpop.eup %690  ;;  %v218_v39 = vsel %vm216_vm5, %v217_v34, %v215_v60  ;;  %v159_v41 = vsel %vm158_vm6, %v991_v14, %v157_v36  ;;  %vm172_vm14 = vcmp.eq.f32.partialorder %v1064_v19, inf }
  0xda   :  { %712 = vrcp.f32 %v241_v27  ;;  %v246_v42 = vadd.f32 1e-05, %v218_v39  ;;  %v162_v43 = vsel %vm160_vm7, %v161_v37, %v159_v41  ;;  %v220_v44 = vmul.f32 %v691_v38, %v1015_v35  ;;  %v693_v45 = vpop.eup %692 }
  0xdb   :  { %714 = vrcp.f32 %v244_v29  ;;  %v238_v46 = vadd.f32 1e-05, %v162_v43  ;;  %v164_v48 = vmul.f32 %v693_v45, %v1023_v40  ;;  %v695_v14 = vpop.eup %694  ;;  %v175_v51 = vand.u32 2147483648, %v1064_v19  ;;  %v484_v45 = vld [vmem:[#allocation2] sm:$0x1] }
  0xdc   :  { %716 = vrcp.f32 %v245_v33  ;;  %v222_v11 = vsel %vm221_vm8, %v1015_v35, %v220_v44  ;;  %v266_v22 = vmul.f32 %v695_v14, %v886_v0  ;;  %vm174_vm15 = vcmp.eq.f32.partialorder %v1064_v19, 0.0 }
  0xdd   :  { %718 = vrcp.f32 %v238_v46  ;;  %v225_v49 = vsel %vm223_vm9, %v224_v47, %v222_v11  ;;  %v697_v56 = vpop.eup %696  ;;  %v166_v57 = vsel %vm165_vm10, %v1023_v40, %v164_v48  ;;  %v491_v43 = vlaneseq }
  0xde   :  { %720 = vrcp.f32 %v246_v42  ;;  %v247_v53 = vadd.f32 1e-05, %v225_v49  ;;  %v699_v58 = vpop.eup %698  ;;  %v169_v61 = vsel %vm167_vm11, %v168_v50, %v166_v57  ;;  %v227_v35 = vmul.f32 %v697_v56, %v1041_v52 }
  0xdf   :  { %v701_v62 = vpop.eup %700  ;;  %v239_v63 = vadd.f32 1e-05, %v169_v61  ;;  %v274_v0 = vmul.f32 %v699_v58, %v890_v2  ;;  %vm485_vm3 = vcmp.gt.f32.partialorder %v484_v45, 0.5  ;;  %v843_v49 = vmov 0  }
  0xe0   :  { %722 = vrcp.f32 %v247_v53  ;;  %v703_v4 = vpop.eup %702  ;;  %v229_v6 = vsel %vm228_vm12, %v1041_v52, %v227_v35 }
  0xe1   :  { %v705_v7 = vpop.eup %704  ;;  %724 = vrcp.f32 %v239_v63  ;;  %v232_v15 = vsel %vm230_vm13, %v231_v3, %v229_v6  ;;  %v267_v24 = vmul.f32 %v703_v4, %v904_v9 }
  0xe2   :  { %v707_v40 = vpop.eup %706  ;;  %v248_v18 = vadd.f32 1e-05, %v232_v15  ;;  %v171_v55 = vmul.f32 %v705_v7, %v1064_v19 }
  0xe3   :  { %v709_v23 = vpop.eup %708  ;;  %v265_v10 = vmul.f32 %v707_v40, %v888_v1  ;;  %v275_v1 = vmul.f32 %v701_v62, %v902_v8  ;;  %v490_v62 = vsel %vm485_vm3, 1, %v843_v49 }
  0xe4   :  { %726 = vrcp.f32 %v248_v18  ;;  %v173_v52 = vsel %vm172_vm14, %v1064_v19, %v171_v55  ;;  %v268_v9 = vmul.f32 %v709_v23, %v912_v13 }
  0xe5   :  { %v176_v28 = vsel %vm174_vm15, %v175_v51, %v173_v52  ;;  %602 = vmatprep.mubr.f32.mxu0 %v265_v10 }
  0xe6   :  { %v711_v27 = vpop.eup %710  ;;  %v240_v30 = vadd.f32 1e-05, %v176_v28  ;;  %603 = vmatmul.mubr.f32.vlgmr.msra.gmra.mxu0 %v266_v22 }
  0xe7   :  { %v713_v54 = vpop.eup %712  ;;  %605 = vmatprep.mubr.f32.mxu0 %v267_v24  ;;  %v269_v34 = vmul.f32 %v711_v27, %v920_v17 }
  0xe8   :  { %v715_v29 = vpop.eup %714  ;;  %v273_v59 = vmul.f32 %v713_v54, %v896_v5  ;;  %728 = vrcp.f32 %v240_v30 }
  0xe9   :  { %v717_v33 = vpop.eup %716  ;;  %v276_v36 = vmul.f32 %v715_v29, %v910_v12 }
  0xea   :  { %614 = vmatprep.mubr.f32.mxu1 %v273_v59  ;;  %v719_v19 = vpop.eup %718  ;;  %606 = vmatmul.mubr.f32.gmra.mxu0 %v268_v9  ;;  %v277_v60 = vmul.f32 %v717_v33, %v918_v16 }
  0xeb   :  { %615 = vmatmul.mubr.f32.vlgmr.msra.gmra.mxu1 %v274_v0  ;;  %v721_v2 = vpop.eup %720  ;;  %v270_v5 = vmul.f32 %v719_v19, %v928_v21  ;;  %608 = vmatprep.mubr.f32.mxu0 %v269_v34 }
  0xec   :  { %617 = vmatprep.mubr.f32.mxu1 %v275_v1  ;;  %v278_v13 = vmul.f32 %v721_v2, %v926_v20 }
  0xed   :  { %v723_v8 = vpop.eup %722 }
  0xee   :  { %v725_v37 = vpop.eup %724  ;;  %609 = vmatmul.mubr.f32.gmra.mxu0 %v270_v5  ;;  %v279_v17 = vmul.f32 %v723_v8, %v934_v25 }
  0xef   :  { %618 = vmatmul.mubr.f32.gmra.mxu1 %v276_v36  ;;  %v271_v38 = vmul.f32 %v725_v37, %v936_v26 }
  0xf0   :  { %620 = vmatprep.mubr.f32.mxu1 %v277_v60 }
  0xf1   :  { %v727_v12 = vpop.eup %726  ;;  %611 = vmatprep.mubr.f32.mxu0 %v271_v38 }
  0xf2   :  { %v280_v16 = vmul.f32 %v727_v12, %v942_v31  ;;  %v492_v31 = vshrl.u32 %v491_v43, 7 }
  0xf3   :  { %621 = vmatmul.mubr.f32.gmra.mxu1 %v278_v13 }
  0xf4   :  { %623 = vmatprep.mubr.f32.mxu1 %v279_v17  ;;  %v493_v35 = vsub.s32 0, %v492_v31 }
  0xf5   :  { %v729_v39 = vpop.eup %728 }
  0xf6   :  { %v272_v21 = vmul.f32 %v729_v39, %v944_v32  ;;  %v494_v22 = vrot.slane %v490_v62, %v493_v35 }
  0xf7   :  { %624 = vmatmul.mubr.f32.gmra.mxu1 %v280_v16 }
  0xf8   :  { %612 = vmatmul.mubr.f32.gmra.mxu0 %v272_v21  ;;  %vm495_vm12 = vcmp.eq.s32.totalorder %v494_v22, 1 }
 0x1a6   :  { %v604_v41 = vpop.f32.mrf.mxu0 }
 0x1a8   :  { %v363_v20 = vpop.f32.mrf.mxu0 }
 0x1a9   :  { %vm442_vm0 = vcmp.gt.f32.partialorder %v604_v41, %v363_v20 }
 0x1aa   :  { %v607_v44 = vpop.f32.mrf.mxu0  ;;  %v444_v26 = vsel %vm442_vm0, %v604_v41, %v363_v20  ;;  %v446_v63 = vsel %vm442_vm0, 1, %v843_v49 }
 0x1ab   :  { %v616_v42 = vpop.f32.mrf.mxu1 }
 0x1ac   :  { %v373_v46 = vpop.f32.mrf.mxu0 }
 0x1ad   :  { %v403_v25 = vpop.f32.mrf.mxu1  ;;  %vm448_vm2 = vcmp.gt.f32.partialorder %v373_v46, %v444_v26 }
 0x1ae   :  { %vm443_vm1 = vcmp.gt.f32.partialorder %v616_v42, %v403_v25  ;;  %v450_v11 = vsel %vm448_vm2, %v373_v46, %v444_v26  ;;  %v610_v48 = vpop.f32.mrf.mxu0  ;;  %v452_v6 = vsel %vm448_vm2, 2, %v446_v63 }
 0x1af   :  { %v619_v47 = vpop.f32.mrf.mxu1  ;;  %v445_v32 = vsel %vm443_vm1, %v616_v42, %v403_v25  ;;  %vm454_vm4 = vcmp.gt.f32.partialorder %v607_v44, %v450_v11  ;;  %v447_v50 = vsel %vm443_vm1, 1, %v843_v49 }
 0x1b0   :  { %v383_v56 = vpop.f32.mrf.mxu0  ;;  %v456_v53 = vsel %vm454_vm4, %v607_v44, %v450_v11  ;;  %v458_v23 = vsel %vm454_vm4, 3, %v452_v6 }
 0x1b1   :  { %v413_v14 = vpop.f32.mrf.mxu1  ;;  %vm460_vm6 = vcmp.gt.f32.partialorder %v383_v56, %v456_v53 }
 0x1b2   :  { %vm449_vm5 = vcmp.gt.f32.partialorder %v413_v14, %v445_v32  ;;  %v462_v7 = vsel %vm460_vm6, %v383_v56, %v456_v53  ;;  %v464_v24 = vsel %vm460_vm6, 4, %v458_v23 }
 0x1b3   :  { %v451_v57 = vsel %vm449_vm5, %v413_v14, %v445_v32  ;;  %v453_v58 = vsel %vm449_vm5, 2, %v447_v50  ;;  %v622_v61 = vpop.f32.mrf.mxu1  ;;  %vm466_vm10 = vcmp.gt.f32.partialorder %v610_v48, %v462_v7 }
 0x1b4   :  { %vm455_vm7 = vcmp.gt.f32.partialorder %v619_v47, %v451_v57  ;;  %v468_v29 = vsel %vm466_vm10, %v610_v48, %v462_v7  ;;  %v470_v30 = vsel %vm466_vm10, 5, %v464_v24 }
 0x1b5   :  { %v423_v3 = vpop.f32.mrf.mxu1  ;;  %v457_v4 = vsel %vm455_vm7, %v619_v47, %v451_v57  ;;  %v459_v15 = vsel %vm455_vm7, 3, %v453_v58 }
 0x1b6   :  { %vm461_vm8 = vcmp.gt.f32.partialorder %v423_v3, %v457_v4 }
 0x1b7   :  { %v463_v40 = vsel %vm461_vm8, %v423_v3, %v457_v4  ;;  %v465_v18 = vsel %vm461_vm8, 4, %v459_v15  ;;  %v625_v55 = vpop.f32.mrf.mxu1 }
 0x1b8   :  { %vm467_vm9 = vcmp.gt.f32.partialorder %v622_v61, %v463_v40  ;;  %v613_v27 = vpop.f32.mrf.mxu0 }
 0x1b9   :  { %v433_v51 = vpop.f32.mrf.mxu1  ;;  %v469_v10 = vsel %vm467_vm9, %v622_v61, %v463_v40  ;;  %v471_v52 = vsel %vm467_vm9, 5, %v465_v18 }
 0x1ba   :  { %vm473_vm11 = vcmp.gt.f32.partialorder %v433_v51, %v469_v10  ;;  %v393_v0 = vpop.f32.mrf.mxu0 }
 0x1bb   :  { %v475_v54 = vsel %vm473_vm11, %v433_v51, %v469_v10  ;;  %v477_v28 = vsel %vm473_vm11, 6, %v471_v52  ;;  %vm472_vm14 = vcmp.gt.f32.partialorder %v393_v0, %v468_v29 }
 0x1bc   :  { %vm479_vm13 = vcmp.gt.f32.partialorder %v625_v55, %v475_v54  ;;  %v474_v9 = vsel %vm472_vm14, %v393_v0, %v468_v29  ;;  %v476_v33 = vsel %vm472_vm14, 6, %v470_v30 }
 0x1bd   :  { %v481_v59 = vsel %vm479_vm13, %v625_v55, %v475_v54  ;;  %v483_v1 = vsel %vm479_vm13, 7, %v477_v28  ;;  %vm478_vm15 = vcmp.gt.f32.partialorder %v613_v27, %v474_v9 }
 0x1be   :  { %v487_v34 = vadd.f32 1.0, %v481_v59  ;;  %v501_v19 = vsel %vm495_vm12, 0, %v483_v1  ;;  %v480_v36 = vsel %vm478_vm15, %v613_v27, %v474_v9  ;;  %v482_v2 = vsel %vm478_vm15, 7, %v476_v33 }
 0x1bf   :  { %503 = vst [vmem:[#allocation9 + $0x8] sm:$0xff] %v501_v19  ;;  %v486_v5 = vadd.f32 1.0, %v480_v36  ;;  %v500_v8 = vsel %vm495_vm12, 0, %v482_v2 }
 0x1c0   :  { %v489_v60 = vmul.f32 0.5, %v487_v34  ;;  %502 = vst [vmem:[#allocation9] sm:$0xff] %v500_v8 }
 0x1c1   :  { %v488_v37 = vmul.f32 0.5, %v486_v5 }
 0x1c2   :  { %v497_v13 = vsel %vm495_vm12, 0.0, %v489_v60 }
 0x1c3   :  { %499 = vst [vmem:[#allocation8 + $0x8] sm:$0xff] %v497_v13 }
 0x1c4   :  { %801 = shalt.err (!%p798_p5)
}
 0x1c5   :  { %527 = dma.vmem_to_hbm [thread:$0]  %s522_s2, 256, %s1157_s4, [#allocation10], %s839_s18, %s839_s18, %s840_s19   ;;  %v496_v17 = vsel %vm495_vm12, 0.0, %v488_v37 }
 0x1c6   :  { %498 = vst [vmem:[#allocation8] sm:$0xff] %v496_v17  ;;  %s810_s11 = scalar_lea.vmem %s510_s7, 256  ;;  %p815_p7 = scmp.lt.s32.totalorder %s510_s7, %s510_s7 }
 0x1c7   :  { %p811_p6 = scmp.ne.s32.totalorder %s510_s7, %s810_s11  ;;  %p816_p8 = scmp.lt.s32.totalorder %s810_s11, %s810_s11 }
 0x1c9   :  { %p817_p9 = por %p816_p8, %p815_p7 }
 0x1cb   :  { %p818_p10 = pnand %p817_p9, %p811_p6 }
 0x1cd   :  { %821 = shalt.err (!%p818_p10)
}
 0x1ce   :  { %515 = dma.vmem_to_hbm [thread:$0]  %s510_s7, 256, %s1156_s3, [#allocation4], %s839_s18, %s839_s18, %s840_s19  }
 0x1cf   :  { %834 = dma.done.wait [#allocation4], 256  }
 0x1d0   :  { %835 = vsyncadd [#allocation4], 4294967040 }
 0x1d1   :  { %836 = dma.done.wait [#allocation10], 256  }
 0x1d2   :  { %837 = vsyncadd [#allocation10], 4294967040 }
 0x1d3   :  { %534 = vsyncpa [#allocation3], 1 }
 0x1d4   :  { %535 = vsyncpa [#allocation6], 1 }
 0x1d5   :  { %536 = vsyncpa [#allocation4], 1 }
 0x1d6   :  { %537 = vsyncpa [#allocation10], 1 }

</bundles_post_ra>
